<compile_context>
chip_gen: v5e
topology: v5e:2x2
jax: 0.10.0
libtpu: 0.0.40
codegen_flags: <defaults>
</compile_context>

<pallas_src>
import jax
import jax.numpy as jnp
from jax.experimental import pallas as pl
from jax.experimental.pallas import tpu as pltpu


def _round_up(a: int, b: int) -> int:
    return ((a + b - 1) // b) * b


def _cdiv(a: int, b: int) -> int:
    return (a + b - 1) // b


# ----------------------------- kernels ------------------------------------


def ffn_resident_kernel(x_ref, w1t_ref, b1_ref, w2t_ref, b2_ref, o_ref):
    # x_ref:   (TM, dm_p) bf16          w1t_ref: (dm_p, dff_p) bf16 (resident)
    # b1_ref:  (1, dff_p) f32           w2t_ref: (dff_p, dm_p) bf16 (resident)
    # b2_ref:  (1, dm_p)  f32           o_ref:   (TM, dm_p)    out dtype
    h = jnp.dot(x_ref[...], w1t_ref[...], preferred_element_type=jnp.float32)
    h = jnp.maximum(h + b1_ref[...], 0.0)
    # Dropout: identity (inference / eval mode).
    y = jnp.dot(h.astype(w2t_ref.dtype), w2t_ref[...],
                preferred_element_type=jnp.float32)
    o_ref[...] = (y + b2_ref[...]).astype(o_ref.dtype)


def ffn_tiled_kernel(x_ref, w1b_ref, b1_ref, w2t_ref, b2_ref, o_ref, acc_ref):
    # x_ref:   (TM, dm_p) bf16          w1b_ref: (dm_p, TF)   bf16 (contiguous block)
    # b1_ref:  (1, TF)    f32           w2t_ref: (TF, dm_p)   bf16
    # b2_ref:  (1, dm_p)  f32           o_ref:   (TM, dm_p)   out dtype
    # acc_ref: (TM, dm_p) f32 scratch (resident across the d_ff reduction axis)
    kf = pl.program_id(1)

    @pl.when(kf == 0)
    def _():
        acc_ref[...] = jnp.zeros_like(acc_ref)

    h = jnp.dot(x_ref[...], w1b_ref[...], preferred_element_type=jnp.float32)
    h = jnp.maximum(h + b1_ref[...], 0.0)
    # Dropout: identity (inference / eval mode).
    acc_ref[...] += jnp.dot(h.astype(w2t_ref.dtype), w2t_ref[...],
                            preferred_element_type=jnp.float32)

    @pl.when(kf == pl.num_programs(1) - 1)
    def _():
        # Add b2 once, at finalize.
        o_ref[...] = (acc_ref[...] + b2_ref[...]).astype(o_ref.dtype)


# ----------------------------- wrapper -------------------------------------


def feed_forward_block(x, w1, b1, w2, b2, *,
                       tm_target=1024, tf_max=1024,
                       weight_resident_bytes_max=16 * 1024 * 1024,
                       vmem_budget_bytes=48 * 1024 * 1024,
                       compute_dtype=jnp.bfloat16):
    """x: (B, S, d_model); w1: (d_ff, d_model); b1: (d_ff,);
       w2: (d_model, d_ff); b2: (d_model,).  Mirrors nn.Linear conventions."""
    B, S, d_model = x.shape
    d_ff = w1.shape[0]
    M = B * S
    cbytes = jnp.dtype(compute_dtype).itemsize
    obytes = jnp.dtype(x.dtype).itemsize

    # Feature dims padded to multiples of 128 -> lane-dense, unmasked stores.
    d_model_p = _round_up(d_model, 128)
    d_ff_p = _round_up(d_ff, 128)

    # --- Token tile: big enough to be MXU-bound on the weight stream, but
    #     keep >= 2 tiles when possible so both v7x TensorCores get work.
    tm = min(tm_target, _round_up(M, 16))
    if M > 16 and _cdiv(M, tm) < 2:
        tm = _round_up(_cdiv(M, 2), 16)

    resident = 2 * d_model_p * d_ff_p * cbytes <= weight_resident_bytes_max

    def resident_vmem(tm_):
        return (2 * 2 * d_model_p * d_ff_p * cbytes   # w1t + w2t (2 buffers each)
                + 2 * (d_ff_p + d_model_p) * 4        # biases
                + 2 * tm_ * d_model_p * cbytes        # x tile (double-buffered)
                + 2 * tm_ * d_model_p * obytes        # out tile (double-buffered)
                + tm_ * d_ff_p * (4 + cbytes)         # h (f32) + bf16 cast temp
                + tm_ * d_model_p * 4)                # f32 y temp before store

    def tiled_vmem(tm_, tf_):
        return (2 * tm_ * d_model_p * cbytes          # x tile
                + 2 * d_model_p * tf_ * cbytes        # w1 block
                + 2 * tf_ * d_model_p * cbytes        # w2 block
                + 2 * (tf_ + d_model_p) * 4           # biases
                + 2 * tm_ * d_model_p * obytes        # out tile
                + tm_ * d_model_p * 4                 # f32 accumulator scratch
                + tm_ * tf_ * (4 + cbytes))           # h (f32) + bf16 cast temp

    tf = 0
    if resident:
        while tm > 16 and resident_vmem(tm) > vmem_budget_bytes:
            tm = max(16, _round_up(tm // 2, 16))
        resident = resident_vmem(tm) <= vmem_budget_bytes

    if not resident:
        tf = max(128, (min(tf_max, d_ff_p) // 128) * 128)
        while d_ff_p % tf != 0:
            tf -= 128
        while tm > 16 and tiled_vmem(tm, tf) > vmem_budget_bytes:
            tm = max(16, _round_up(tm // 2, 16))
        while tf > 128 and tiled_vmem(tm, tf) > vmem_budget_bytes:
            tf -= 128

    m_p = _round_up(M, tm)
    num_m = m_p // tm

    # --- Prepare operands (skip padding copies when shapes already align).
    # TODO(synk): in a real model, transpose/cast/pad (and pre-block) the
    # weights once at parameter-load time instead of per forward call.
    x2d = x.reshape(M, d_model).astype(compute_dtype)
    if (m_p, d_model_p) != (M, d_model):
        x2d = jnp.zeros((m_p, d_model_p), compute_dtype).at[:M, :d_model].set(x2d)

    w1t = w1.T.astype(compute_dtype)                      # (d_model, d_ff)
    w2t = w2.T.astype(compute_dtype)                      # (d_ff, d_model)
    if (d_model_p, d_ff_p) != (d_model, d_ff):
        w1t = jnp.zeros((d_model_p, d_ff_p), compute_dtype
                        ).at[:d_model, :d_ff].set(w1t)
        w2t = jnp.zeros((d_ff_p, d_model_p), compute_dtype
                        ).at[:d_ff, :d_model].set(w2t)
    b1r = jnp.zeros((1, d_ff_p), jnp.float32).at[0, :d_ff].set(
        b1.astype(jnp.float32))
    b2r = jnp.zeros((1, d_model_p), jnp.float32).at[0, :d_model].set(
        b2.astype(jnp.float32))

    flops = 4 * m_p * d_model_p * d_ff_p  # two matmuls, 2*M*N*K each

    if resident:
        vmem_est = int(1.2 * resident_vmem(tm)) + (1 << 20)
        cost = pl.CostEstimate(
            flops=flops, transcendentals=0,
            bytes_accessed=(x2d.size * cbytes + w1t.size * cbytes
                            + w2t.size * cbytes + (b1r.size + b2r.size) * 4
                            + m_p * d_model_p * obytes))
        out2d = pl.pallas_call(
            ffn_resident_kernel,
            out_shape=jax.ShapeDtypeStruct((m_p, d_model_p), x.dtype),
            grid_spec=pltpu.PrefetchScalarGridSpec(
                num_scalar_prefetch=0,
                grid=(num_m,),
                in_specs=[
                    pl.BlockSpec((tm, d_model_p), lambda i: (i, 0)),       # x tile
                    pl.BlockSpec((d_model_p, d_ff_p), lambda i: (0, 0)),   # W1^T resident
                    pl.BlockSpec((1, d_ff_p), lambda i: (0, 0)),           # b1
                    pl.BlockSpec((d_ff_p, d_model_p), lambda i: (0, 0)),   # W2^T resident
                    pl.BlockSpec((1, d_model_p), lambda i: (0, 0)),        # b2
                ],
                out_specs=pl.BlockSpec((tm, d_model_p), lambda i: (i, 0)),
            ),
            compiler_params=pltpu.CompilerParams(
                dimension_semantics=("parallel",),
                vmem_limit_bytes=max(vmem_est, 32 * 1024 * 1024),
            ),
            cost_estimate=cost,
        )(x2d, w1t, b1r, w2t, b2r)
    else:
        num_f = d_ff_p // tf
        # Pre-block W1^T so each (d_model_p, tf) weight tile is one contiguous
        # HBM burst (fixes the strided column DMA of a (d_model_p, d_ff_p) slab).
        w1b = (w1t.reshape(d_model_p, num_f, tf)
                  .transpose(1, 0, 2)
                  .reshape(num_f * d_model_p, tf))
        vmem_est = int(1.2 * tiled_vmem(tm, tf)) + (1 << 20)
        cost = pl.CostEstimate(
            flops=flops, transcendentals=0,
            bytes_accessed=(x2d.size * cbytes
                            + num_m * (w1b.size + w2t.size) * cbytes
                            + (b1r.size + b2r.size) * 4
                            + m_p * d_model_p * obytes))
        out2d = pl.pallas_call(
            ffn_tiled_kernel,
            out_shape=jax.ShapeDtypeStruct((m_p, d_model_p), x.dtype),
            grid_spec=pltpu.PrefetchScalarGridSpec(
                num_scalar_prefetch=0,
                grid=(num_m, num_f),                       # reduction (d_ff) last
                in_specs=[
                    pl.BlockSpec((tm, d_model_p), lambda i, k: (i, 0)),        # x tile
                    pl.BlockSpec((d_model_p, tf), lambda i, k: (k, 0)),        # W1 row-block
                    pl.BlockSpec((1, tf), lambda i, k: (0, k)),                # b1 slice
                    pl.BlockSpec((tf, d_model_p), lambda i, k: (k, 0)),        # W2^T row-block
                    pl.BlockSpec((1, d_model_p), lambda i, k: (0, 0)),         # b2
                ],
                out_specs=pl.BlockSpec((tm, d_model_p), lambda i, k: (i, 0)),
                scratch_shapes=[pltpu.VMEM((tm, d_model_p), jnp.float32)],
            ),
            compiler_params=pltpu.CompilerParams(
                dimension_semantics=("parallel", "arbitrary"),
                vmem_limit_bytes=max(vmem_est, 32 * 1024 * 1024),
            ),
            cost_estimate=cost,
        )(x2d, w1b, b1r, w2t, b2r)

    if (m_p, d_model_p) != (M, d_model):
        out2d = out2d[:M, :d_model]
    return out2d.reshape(B, S, d_model)


# ------------------------------- test ---------------------------------------


def _ref(x, w1, b1, w2, b2):
    # Plain-JAX reference (dropout = identity in eval mode).
    return jnp.maximum(x @ w1.T + b1, 0.0) @ w2.T + b2


if __name__ == "__main__":
    key = jax.random.PRNGKey(0)

    # --- Test 1: small shapes (resident-weight path). ------------------------
    B, S, d_model, d_ff = 2, 8, 32, 64
    k = jax.random.split(key, 10)
    x = jax.random.normal(k[0], (B, S, d_model), dtype=jnp.float32)
    w1 = jax.random.normal(k[1], (d_ff, d_model), dtype=jnp.float32) * 0.1
    b1 = jax.random.normal(k[2], (d_ff,), dtype=jnp.float32) * 0.1
    w2 = jax.random.normal(k[3], (d_model, d_ff), dtype=jnp.float32) * 0.1
    b2 = jax.random.normal(k[4], (d_model,), dtype=jnp.float32) * 0.1

    out = jax.block_until_ready(feed_forward_block(x, w1, b1, w2, b2))
    ref = _ref(x, w1, b1, w2, b2)
    assert out.shape == (B, S, d_model)
    err = float(jnp.max(jnp.abs(out - ref)))
    assert jnp.allclose(out, ref, atol=5e-2, rtol=5e-2), err

    # --- Test 2: force the tiled d_ff-reduction path (num_f=2, num_m=2). -----
    B2, S2, dm2, dff2 = 2, 64, 128, 256
    x2 = jax.random.normal(k[5], (B2, S2, dm2), dtype=jnp.float32)
    w1_2 = jax.random.normal(k[6], (dff2, dm2), dtype=jnp.float32) * 0.1
    b1_2 = jax.random.normal(k[7], (dff2,), dtype=jnp.float32) * 0.1
    w2_2 = jax.random.normal(k[8], (dm2, dff2), dtype=jnp.float32) * 0.1
    b2_2 = jax.random.normal(k[9], (dm2,), dtype=jnp.float32) * 0.1

    out2 = jax.block_until_ready(
        feed_forward_block(x2, w1_2, b1_2, w2_2, b2_2,
                           weight_resident_bytes_max=0, tf_max=128))
    ref2 = _ref(x2, w1_2, b1_2, w2_2, b2_2)
    assert out2.shape == (B2, S2, dm2)
    err2 = float(jnp.max(jnp.abs(out2 - ref2)))
    assert jnp.allclose(out2, ref2, atol=5e-2, rtol=5e-2), err2

    print("KERNEL_OK")
</pallas_src>

<mosaic_0001>
module attributes {stable_mosaic.version = 11 : i64} {
  func.func @ffn_resident_kernel(%arg0: i32, %arg1: memref<16x128xbf16, #tpu.memory_space<vmem>>, %arg2: memref<128x128xbf16, #tpu.memory_space<vmem>>, %arg3: memref<1x128xf32, #tpu.memory_space<vmem>>, %arg4: memref<128x128xbf16, #tpu.memory_space<vmem>>, %arg5: memref<1x128xf32, #tpu.memory_space<vmem>>, %arg6: memref<16x128xf32, #tpu.memory_space<vmem>>) attributes {dimension_semantics = [#tpu.dimension_semantics<parallel>], iteration_bounds = array<i64: 1>, scalar_prefetch = 0 : i64, scratch_operands = 0 : i64, tpu.core_type = #tpu.core_type<tc>, window_params = [{transform_indices = @transform_0, window_bounds = array<i64: 16, 128>}, {pipeline_mode = #tpu.pipeline_mode<synchronous>, transform_indices = @transform_1, window_bounds = array<i64: 128, 128>}, {pipeline_mode = #tpu.pipeline_mode<synchronous>, transform_indices = @transform_2, window_bounds = array<i64: 1, 128>}, {pipeline_mode = #tpu.pipeline_mode<synchronous>, transform_indices = @transform_3, window_bounds = array<i64: 128, 128>}, {pipeline_mode = #tpu.pipeline_mode<synchronous>, transform_indices = @transform_4, window_bounds = array<i64: 1, 128>}, {transform_indices = @transform_5, window_bounds = array<i64: 16, 128>}]} {
    %c0 = arith.constant 0 : index
    %c0_0 = arith.constant 0 : index
    %0 = vector.load %arg1[%c0, %c0_0] : memref<16x128xbf16, #tpu.memory_space<vmem>>, vector<16x128xbf16>
    %c0_1 = arith.constant 0 : index
    %c0_2 = arith.constant 0 : index
    %1 = vector.load %arg2[%c0_1, %c0_2] : memref<128x128xbf16, #tpu.memory_space<vmem>>, vector<128x128xbf16>
    %cst = arith.constant dense<0.000000e+00> : vector<16x128xf32>
    %2 = tpu.matmul %0, %1, %cst {dimension_numbers = #tpu.dot_dimension_numbers<[1], [0], [0], [1], [0, 0, 1, 1], [], []>} : vector<16x128xbf16>, vector<128x128xbf16>, vector<16x128xf32> -> vector<16x128xf32>
    %c0_3 = arith.constant 0 : index
    %c0_4 = arith.constant 0 : index
    %3 = vector.load %arg3[%c0_3, %c0_4] : memref<1x128xf32, #tpu.memory_space<vmem>>, vector<1x128xf32>
    %4 = vector.broadcast %3 : vector<1x128xf32> to vector<16x128xf32>
    %5 = arith.addf %2, %4 : vector<16x128xf32>
    %cst_5 = arith.constant 0.000000e+00 : f32
    %6 = vector.broadcast %cst_5 : f32 to vector<16x128xf32>
    %7 = arith.maximumf %5, %6 : vector<16x128xf32>
    %8 = arith.truncf %7 : vector<16x128xf32> to vector<16x128xbf16>
    %c0_6 = arith.constant 0 : index
    %c0_7 = arith.constant 0 : index
    %9 = vector.load %arg4[%c0_6, %c0_7] : memref<128x128xbf16, #tpu.memory_space<vmem>>, vector<128x128xbf16>
    %cst_8 = arith.constant dense<0.000000e+00> : vector<16x128xf32>
    %10 = tpu.matmul %8, %9, %cst_8 {dimension_numbers = #tpu.dot_dimension_numbers<[1], [0], [0], [1], [0, 0, 1, 1], [], []>} : vector<16x128xbf16>, vector<128x128xbf16>, vector<16x128xf32> -> vector<16x128xf32>
    %c0_9 = arith.constant 0 : index
    %c0_10 = arith.constant 0 : index
    %11 = vector.load %arg5[%c0_9, %c0_10] : memref<1x128xf32, #tpu.memory_space<vmem>>, vector<1x128xf32>
    %12 = vector.broadcast %11 : vector<1x128xf32> to vector<16x128xf32>
    %13 = arith.addf %10, %12 : vector<16x128xf32>
    %c0_11 = arith.constant 0 : index
    %c0_12 = arith.constant 0 : index
    %14 = vector.load %arg6[%c0_11, %c0_12] : memref<16x128xf32, #tpu.memory_space<vmem>>, vector<16x128xf32>
    tpu.vector_store %arg6[%c0_11, %c0_12], %13 {strides = array<i32>} : memref<16x128xf32, #tpu.memory_space<vmem>>, vector<16x128xf32>,
    return
  }
  func.func @transform_0(%arg0: i32) -> (i32, i32) {
    %c0_i32 = arith.constant 0 : i32
    %c0_i32_0 = arith.constant 0 : i32
    return %arg0, %c0_i32 : i32, i32
  }
  func.func @transform_1(%arg0: i32) -> (i32, i32) {
    %c0_i32 = arith.constant 0 : i32
    %c0_i32_0 = arith.constant 0 : i32
    %c0_i32_1 = arith.constant 0 : i32
    return %c0_i32, %c0_i32_0 : i32, i32
  }
  func.func @transform_2(%arg0: i32) -> (i32, i32) {
    %c0_i32 = arith.constant 0 : i32
    %c0_i32_0 = arith.constant 0 : i32
    %c0_i32_1 = arith.constant 0 : i32
    return %c0_i32, %c0_i32_0 : i32, i32
  }
  func.func @transform_3(%arg0: i32) -> (i32, i32) {
    %c0_i32 = arith.constant 0 : i32
    %c0_i32_0 = arith.constant 0 : i32
    %c0_i32_1 = arith.constant 0 : i32
    return %c0_i32, %c0_i32_0 : i32, i32
  }
  func.func @transform_4(%arg0: i32) -> (i32, i32) {
    %c0_i32 = arith.constant 0 : i32
    %c0_i32_0 = arith.constant 0 : i32
    %c0_i32_1 = arith.constant 0 : i32
    return %c0_i32, %c0_i32_0 : i32, i32
  }
  func.func @transform_5(%arg0: i32) -> (i32, i32) {
    %c0_i32 = arith.constant 0 : i32
    %c0_i32_0 = arith.constant 0 : i32
    return %arg0, %c0_i32 : i32, i32
  }
}

</mosaic_0001>

<bundles_post_ra>
// kernel: tpu_custom_call.1
= control target key start
LH: loop header
LB: loop body
LE: loop exit
PB: predicated region body
PF: predicated region fallthrough
CT: control target
= control target key end

     0   :  { %10 = vsyncpa [#allocation3], 0  ;;  %s518_s0 = inlined_call_operand.hbm [shape: bf16[16,128], index: 0, kind: input, shape index: {}]   ;;  %s519_s1 = inlined_call_operand.hbm [shape: bf16[128,128], index: 1, kind: input, shape index: {}]   ;;  %s520_s2 = inlined_call_operand.vmem [shape: f32[1,128], index: 2, kind: input, shape index: {}]   ;;  %s521_s3 = inlined_call_operand.hbm [shape: bf16[128,128], index: 3, kind: input, shape index: {}]   ;;  %s522_s4 = inlined_call_operand.vmem [shape: f32[1,128], index: 4, kind: input, shape index: {}]   ;;  %s523_s5 = inlined_call_operand.hbm [shape: f32[16,128], index: 5, kind: output, shape index: {}]  }
   0x1   :  { %11 = vsyncpa [#allocation6], 0 }
   0x2   :  { %12 = vsyncpa [#allocation4], 0  ;;  %s30_s20 = sshll.u32 %s519_s1, 4  ;;  %s462_s21 = smov [#allocation5]   ;;  %s31_s20 = int_to_ptr.hbm [resolvable:$true] %s30_s20 }
   0x3   :  { %s32_s22 = sshll.u32 %s462_s21, 4  ;;  %s17_s25 = sshll.u32 %s518_s0, 4  ;;  %s33_s22 = int_to_ptr.vmem [resolvable:$true] %s32_s22  ;;  %s18_s25 = int_to_ptr.hbm [resolvable:$true] %s17_s25 }
   0x4   :  { %s463_s26 = smov 64   ;;  %s464_s27 = smov 4  }
   0x5   :  { %38 = dma.hbm_to_vmem [thread:$0]  %s31_s20, 1024, %s33_s22, [#allocation6], %s463_s26, %s463_s26, %s464_s27  }
   0x6   :  { %s465_s28 = smov [#allocation2]   ;;  %s45_s7 = sshll.u32 %s521_s3, 4  ;;  %s46_s7 = int_to_ptr.hbm [resolvable:$true] %s45_s7 }
   0x7   :  { %s19_s29 = sshll.u32 %s465_s28, 4  ;;  %s466_s1 = smov [#allocation7]   ;;  %s20_s29 = int_to_ptr.vmem [resolvable:$true] %s19_s29 }
   0x8   :  { %25 = dma.hbm_to_vmem [thread:$0]  %s18_s25, 128, %s20_s29, [#allocation3], %s463_s26, %s463_s26, %s464_s27  }
   0x9   :  { %s47_s8 = sshll.u32 %s466_s1, 4  ;;  %s48_s8 = int_to_ptr.vmem [resolvable:$true] %s47_s8 }
   0xa   :  { %53 = dma.hbm_to_vmem [thread:$0]  %s46_s7, 1024, %s48_s8, [#allocation6], %s463_s26, %s463_s26, %s464_s27  }
   0xb   :  { %456 = dma.done.wait [#allocation3], 128  }
   0xc   :  { %457 = vsyncadd [#allocation3], 4294967168 }
   0xd   :  { %458 = dma.done.wait [#allocation6], 2048  }
   0xe   :  { %459 = vsyncadd [#allocation6], 4294965248  ;;  %v341_v0 = vld [vmem:[#allocation5 + $0x38] sm:$0xff]  ;;  %v340_v1 = vld [vmem:[#allocation5 + $0x30] sm:$0xff]  ;;  %s467_s11 = smov [#allocation8]   ;;  %s468_s15 = smov 128  }
   0xf   :  { %144 = vmatpush.bf16.msra.mxu0 %v341_v0  ;;  %v349_v2 = vld [vmem:[#allocation7 + $0x38] sm:$0xff]  ;;  %v348_v3 = vld [vmem:[#allocation7 + $0x30] sm:$0xff]  ;;  %v339_v4 = vld [vmem:[#allocation5 + $0x28] sm:$0xff]  ;;  %s249_s12 = sshll.u32 %s467_s11, 4  ;;  %s469_s16 = smov 8   ;;  %s250_s12 = int_to_ptr.vmem [resolvable:$true] %s249_s12 }
  0x10   :  { %229 = vmatpush.bf16.msra.mxu1 %v349_v2  ;;  %v347_v5 = vld [vmem:[#allocation7 + $0x28] sm:$0xff]  ;;  %v338_v6 = vld [vmem:[#allocation5 + $0x20] sm:$0xff]  ;;  %v337_v8 = vld [vmem:[#allocation5 + $0x18] sm:$0xff] }
  0x11   :  { %v346_v7 = vld [vmem:[#allocation7 + $0x20] sm:$0xff]  ;;  %v336_v9 = vld [vmem:[#allocation5 + $0x10] sm:$0xff]  ;;  %v335_v10 = vld [vmem:[#allocation5 + $0x8] sm:$0xff] }
  0x12   :  { %v334_v11 = vld [vmem:[#allocation5] sm:$0xff]  ;;  %v333_v12 = vld [vmem:[#allocation2] sm:$0xff]  ;;  %v344_v14 = vld [vmem:[#allocation7 + $0x10] sm:$0xff] }
  0x13   :  { %145 = vmatpush.bf16.msra.mxu0 %v340_v1  ;;  %v345_v13 = vld [vmem:[#allocation7 + $0x18] sm:$0xff]  ;;  %v343_v15 = vld [vmem:[#allocation7 + $0x8] sm:$0xff]  ;;  %v342_v16 = vld [vmem:[#allocation7] sm:$0xff] }
  0x14   :  { %230 = vmatpush.bf16.msra.mxu1 %v348_v3  ;;  %v358_v18 = vld [vmem:[%s520_s2] ss:$0 sm:$0xff]  ;;  %s251_s2 = sshll.u32 %s523_s5, 4  ;;  %s252_s2 = int_to_ptr.hbm [resolvable:$true] %s251_s2 }
  0x15   :  { %v359_v25 = vld [vmem:[%s522_s4] ss:$0 sm:$0xff] }
  0x17   :  { %146 = vmatpush.bf16.msra.mxu0 %v339_v4 }
  0x18   :  { %231 = vmatpush.bf16.msra.mxu1 %v347_v5 }
  0x1b   :  { %147 = vmatpush.bf16.msra.mxu0 %v338_v6 }
  0x1c   :  { %232 = vmatpush.bf16.msra.mxu1 %v346_v7 }
  0x1f   :  { %148 = vmatpush.bf16.msra.mxu0 %v337_v8 }
  0x20   :  { %233 = vmatpush.bf16.msra.mxu1 %v345_v13 }
  0x23   :  { %149 = vmatpush.bf16.msra.mxu0 %v336_v9 }
  0x24   :  { %234 = vmatpush.bf16.msra.mxu1 %v344_v14 }
  0x27   :  { %150 = vmatpush.bf16.msra.mxu0 %v335_v10 }
  0x28   :  { %235 = vmatpush.bf16.msra.mxu1 %v343_v15 }
  0x2b   :  { %151 = vmatpush.bf16.msra.mxu0 %v334_v11 }
  0x2c   :  { %236 = vmatpush.bf16.msra.mxu1 %v342_v16 }
  0x2e   :  { %152 = vmatmul.bf16.vlgmr.msra.gmra.mxu0 %v333_v12 }
  0xab   :  { %v153_v17 = vpop.f32.mrf.mxu0 }
  0xac   :  { %v154_v19 = vadd.f32 %v358_v18, %v153_v17 }
  0xae   :  { %v158_v22 = vmax.f32 %v154_v19, 0.0 }
  0xb3   :  { %v155_v20 = vpop.f32.mrf.mxu0 }
  0xb4   :  { %v156_v21 = vadd.f32 %v358_v18, %v155_v20 }
  0xb6   :  { %v159_v23 = vmax.f32 %v156_v21, 0.0 }
  0xb8   :  { %v160_v24 = vpack.c.bf16 %v159_v23, %v158_v22 }
  0xba   :  { %237 = vmatmul.bf16.vlgmr.msra.gmra.mxu1 %v160_v24 }
 0x137   :  { %v238_v26 = vpop.f32.mrf.mxu1 }
 0x138   :  { %v239_v27 = vadd.f32 %v359_v25, %v238_v26 }
 0x13a   :  { %243 = vst [vmem:[#allocation8] sm:$0xff] %v239_v27 }
 0x13f   :  { %v240_v28 = vpop.f32.mrf.mxu1 }
 0x140   :  { %v241_v29 = vadd.f32 %v359_v25, %v240_v28 }
 0x142   :  { %244 = vst [vmem:[#allocation8 + $0x8] sm:$0xff] %v241_v29 }
 0x143   :  { %257 = dma.vmem_to_hbm [thread:$0]  %s250_s12, 256, %s252_s2, [#allocation4], %s468_s15, %s468_s15, %s469_s16  }
 0x144   :  { %460 = dma.done.wait [#allocation4], 256  }
 0x145   :  { %461 = vsyncadd [#allocation4], 4294967040 }
 0x146   :  { %262 = vsyncpa [#allocation3], 1 }
 0x147   :  { %263 = vsyncpa [#allocation6], 1 }
 0x148   :  { %264 = vsyncpa [#allocation4], 1 }

</bundles_post_ra>
